<compile_context>
chip_gen: v7x
topology: tpu7x:2x2x1
jax: 0.10.0
libtpu: 0.0.40
codegen_flags: <defaults>
</compile_context>

<pallas_src>
import math

import jax
import jax.numpy as jnp
import numpy as np
from jax import lax
from jax.experimental import pallas as pl
from jax.experimental.pallas import tpu as pltpu


_INV_SQRT2 = 1.0 / math.sqrt(2.0)


def _gelu_exact(x):
    # PyTorch nn.GELU() default (approximate='none'): 0.5*x*(1+erf(x/sqrt(2)))
    return 0.5 * x * (1.0 + lax.erf(x * _INV_SQRT2))


def _round_up(a, b):
    return ((a + b - 1) // b) * b


# ------------------------------ fused kernel ---------------------------------

def node_block_kernel(idx_ref, x_ref,
                      w1t_ref, b1_ref, w2t_ref, b2_ref, w3t_ref, b3_ref,
                      gamma_ref, beta_ref, o_ref):
    t = pl.program_id(1)                 # row-tile (scatter reduction) axis

    # ---- 3-layer MLP in feature-on-sublane / rows-on-lane layout ----
    # x_ref: (din_pad, tile_s) bf16; weights pre-transposed in the wrapper.
    h = jnp.dot(w1t_ref[...], x_ref[...],
                preferred_element_type=jnp.float32)          # (H, tile_s) f32
    h = _gelu_exact(h + b1_ref[...])
    h = jnp.dot(w2t_ref[...], h.astype(jnp.bfloat16),
                preferred_element_type=jnp.float32)
    h = _gelu_exact(h + b2_ref[...])
    y = jnp.dot(w3t_ref[...], h.astype(jnp.bfloat16),
                preferred_element_type=jnp.float32) + b3_ref[...]  # (nout, tile_s)

    # ---- LayerNorm over features (axis 0 = sublanes), f32 statistics ----
    mu = jnp.mean(y, axis=0, keepdims=True)                  # (1, tile_s)
    var = jnp.mean((y - mu) ** 2, axis=0, keepdims=True)
    y = (y - mu) * lax.rsqrt(var + 1e-5) * gamma_ref[...] + beta_ref[...]

    # ---- fused scatter-sum epilogue: resident (dimSize, nout) accumulator ----
    @pl.when(t == 0)
    def _():
        o_ref[...] = jnp.zeros_like(o_ref)

    d_size = o_ref.shape[0]
    idx = idx_ref[...]                                        # (1, tile_s) i32
    iota_d = lax.broadcasted_iota(jnp.int32, (d_size, idx.shape[1]), 0)
    onehot = (iota_d == idx).astype(jnp.float32)              # exact 0/1, f32
    # (dimSize, tile_s) x (nout, tile_s) contracted over tile_s -> (dimSize, nout)
    # kept fully in f32 so the post-LayerNorm output is never re-quantized.
    o_ref[...] += lax.dot_general(
        onehot, y, (((1,), (1,)), ((), ())),
        preferred_element_type=jnp.float32)


# -------------------------------- wrapper -------------------------------------

def node_block_forward(params, gatheredNodes, elementNodes, elements,
                       elemConnScatter, maxNelem, nodeDim, dimSize,
                       tile_rows=1024):
    B, nElem, mN, nin = gatheredNodes.shape
    assert mN == maxNelem and B == nodeDim
    nen = elementNodes.shape[-1]
    nelem_feat = elements.shape[-1]
    H = params["w2"].shape[0]
    nout = params["w3"].shape[1]
    S = nElem * maxNelem
    din = nin + nen + nelem_feat
    din_pad = _round_up(din, 16)          # bf16 sublane packing of the K dim

    # ---- row-tile sizing: lane-aligned (multiple of 128), rows are padded ----
    tile_rows = max(128, _round_up(tile_rows, 128))
    if S <= tile_rows:
        tile_s = _round_up(S, 128)
    else:
        tile_s = tile_rows
    s_pad = _round_up(S, tile_s)
    num_tiles = s_pad // tile_s

    # ---- build one (B, din_pad, S_pad) bf16 input, rows on the lane axis ----
    # (concat + element expansion hoisted out of the kernel; no per-step
    #  replication-mask construction on the VALU.)
    g2 = gatheredNodes.reshape(B, S, nin)
    en2 = elementNodes.reshape(B, S, nen)
    e_exp = jnp.broadcast_to(elements[:, :, None, :],
                             (B, nElem, maxNelem, nelem_feat)).reshape(B, S, nelem_feat)
    x = jnp.concatenate([g2, en2, e_exp], axis=-1).astype(jnp.bfloat16)
    x_t = jnp.transpose(x, (0, 2, 1))                          # (B, din, S)
    x_t = jnp.pad(x_t, ((0, 0), (0, din_pad - din), (0, s_pad - S)))

    # scatter indices: padded rows get the sentinel dimSize -> one-hot column
    # is all zeros -> dropped.  (Any genuinely out-of-range index is likewise
    # silently dropped rather than erroring, unlike torch_scatter.)
    idx = elemConnScatter.reshape(-1).astype(jnp.int32)
    idx = jnp.pad(idx, (0, s_pad - S), constant_values=dimSize)
    idx2d = idx.reshape(1, s_pad)

    # ---- weights pre-transposed (bf16 MXU operands); biases / LN in f32 ----
    w1t = jnp.pad(params["w1"].astype(jnp.bfloat16).T,
                  ((0, 0), (0, din_pad - din)))                # (H, din_pad)
    w2t = params["w2"].astype(jnp.bfloat16).T                  # (H, H)
    w3t = params["w3"].astype(jnp.bfloat16).T                  # (nout, H)
    b1t = params["b1"].reshape(-1, 1).astype(jnp.float32)      # (H, 1)
    b2t = params["b2"].reshape(-1, 1).astype(jnp.float32)
    b3t = params["b3"].reshape(-1, 1).astype(jnp.float32)      # (nout, 1)
    gamma_t = params["gamma"].reshape(-1, 1).astype(jnp.float32)
    beta_t = params["beta"].reshape(-1, 1).astype(jnp.float32)

    # ---- explicit VMEM budget (v5e scoped default 16 MiB, v7x physical 64) ----
    est = (2 * (din_pad * tile_s * 2)               # x tile, double-buffered
           + 2 * (tile_s * 4)                       # idx tile
           + 2 * dimSize * nout * 4                 # resident accumulator
           + (H * din_pad + H * H + nout * H) * 2   # weights
           + (2 * H + 3 * nout) * 4                 # biases / LN params
           + 6 * H * tile_s * 4)                    # activation temporaries
    vmem_limit = int(min(max(4 * est, 32 * 1024 * 1024), 48 * 1024 * 1024))

    rep0 = lambda b, t: (0, 0)
    return pl.pallas_call(
        node_block_kernel,
        out_shape=jax.ShapeDtypeStruct((B, dimSize, nout), jnp.float32),
        grid=(B, num_tiles),
        in_specs=[
            pl.BlockSpec((1, tile_s), lambda b, t: (0, t)),              # idx
            pl.BlockSpec((None, din_pad, tile_s), lambda b, t: (b, 0, t)),  # x^T
            pl.BlockSpec((H, din_pad), rep0),                            # W1^T
            pl.BlockSpec((H, 1), rep0),                                  # b1
            pl.BlockSpec((H, H), rep0),                                  # W2^T
            pl.BlockSpec((H, 1), rep0),                                  # b2
            pl.BlockSpec((nout, H), rep0),                               # W3^T
            pl.BlockSpec((nout, 1), rep0),                               # b3
            pl.BlockSpec((nout, 1), rep0),                               # gamma
            pl.BlockSpec((nout, 1), rep0),                               # beta
        ],
        out_specs=pl.BlockSpec((None, dimSize, nout), lambda b, t: (b, 0, 0)),
        compiler_params=pltpu.CompilerParams(
            dimension_semantics=("parallel", "arbitrary"),
            vmem_limit_bytes=vmem_limit),
    )(idx2d, x_t, w1t, b1t, w2t, b2t, w3t, b3t, gamma_t, beta_t)


# --------------------------- pure-JAX reference --------------------------------

def node_block_reference(params, gatheredNodes, elementNodes, elements,
                         elemConnScatter, maxNelem, nodeDim, dimSize):
    b, n_elem, m_n, _ = gatheredNodes.shape
    n_element = elements.shape[-1]
    hidden = params["w3"].shape[1]
    elem_exp = jnp.broadcast_to(elements[:, :, None, :],
                                (b, n_elem, maxNelem, n_element))
    x = jnp.concatenate([gatheredNodes, elementNodes, elem_exp], axis=-1)
    h = jax.nn.gelu(x @ params["w1"] + params["b1"][0], approximate=False)
    h = jax.nn.gelu(h @ params["w2"] + params["b2"][0], approximate=False)
    y = h @ params["w3"] + params["b3"][0]
    mu = jnp.mean(y, axis=-1, keepdims=True)
    var = jnp.mean((y - mu) ** 2, axis=-1, keepdims=True)
    y = (y - mu) / jnp.sqrt(var + 1e-5) * params["gamma"][0] + params["beta"][0]
    interim = y.reshape(nodeDim, -1, hidden)
    out = jnp.zeros((nodeDim, dimSize, hidden), jnp.float32)
    return out.at[:, elemConnScatter, :].add(interim)


# ---------------------------------- main ---------------------------------------

if __name__ == "__main__":
    nin, nElementNode, nElement = 4, 3, 5
    hidden_dim = 32
    nout = hidden_dim            # reshape([nodeDim, -1, hidden_dim]) implies this
    nodeDim = 2                  # batch
    dimSize = 16                 # number of nodes to scatter into
    din = nin + nElementNode + nElement

    key = jax.random.PRNGKey(0)
    kp = jax.random.split(key, 6)
    scale = 0.1
    params = {
        "w1": scale * jax.random.normal(kp[0], (din, hidden_dim), jnp.float32),
        "b1": scale * jax.random.normal(kp[1], (1, hidden_dim), jnp.float32),
        "w2": scale * jax.random.normal(kp[2], (hidden_dim, hidden_dim), jnp.float32),
        "b2": scale * jax.random.normal(kp[3], (1, hidden_dim), jnp.float32),
        "w3": scale * jax.random.normal(kp[4], (hidden_dim, nout), jnp.float32),
        "b3": scale * jax.random.normal(kp[5], (1, nout), jnp.float32),
        "gamma": jnp.ones((1, nout), jnp.float32),    # nn.LayerNorm default init
        "beta": jnp.zeros((1, nout), jnp.float32),
    }

    def run_case(case_key, nElem, maxNelem, tile_rows):
        ks = jax.random.split(case_key, 4)
        g = jax.random.normal(ks[0], (nodeDim, nElem, maxNelem, nin), jnp.float32)
        en = jax.random.normal(ks[1], (nodeDim, nElem, maxNelem, nElementNode),
                               jnp.float32)
        e = jax.random.normal(ks[2], (nodeDim, nElem, nElement), jnp.float32)
        idx = jax.random.randint(ks[3], (nElem * maxNelem,), 0, dimSize, jnp.int32)

        out = node_block_forward(params, g, en, e, idx, maxNelem, nodeDim,
                                 dimSize, tile_rows=tile_rows)
        out = jax.block_until_ready(out)
        ref = node_block_reference(params, g, en, e, idx, maxNelem, nodeDim,
                                   dimSize)
        # Residual error comes only from bf16 MXU operands in the 3 MLP layers
        # (scatter + LayerNorm statistics are f32); tolerance kept conservative.
        np.testing.assert_allclose(np.asarray(out), np.asarray(ref),
                                   rtol=5e-2, atol=5e-2)
        assert out.shape == (nodeDim, dimSize, nout)

    # single-tile path (32 rows padded to a 128-lane tile)
    run_case(jax.random.fold_in(key, 1), nElem=8, maxNelem=4, tile_rows=1024)
    # multi-tile path: 192 rows, tile_s=128 -> 2 row tiles + padding + accumulation
    run_case(jax.random.fold_in(key, 2), nElem=48, maxNelem=4, tile_rows=128)

    print("KERNEL_OK")
</pallas_src>

<mosaic_0001>
module attributes {stable_mosaic.version = 11 : i64} {
  func.func @node_block_kernel(%arg0: i32, %arg1: i32, %arg2: memref<1x128xi32, #tpu.memory_space<vmem>>, %arg3: memref<1x16x128xbf16, #tpu.memory_space<vmem>>, %arg4: memref<32x16xbf16, #tpu.memory_space<vmem>>, %arg5: memref<32x1xf32, #tpu.memory_space<vmem>>, %arg6: memref<32x32xbf16, #tpu.memory_space<vmem>>, %arg7: memref<32x1xf32, #tpu.memory_space<vmem>>, %arg8: memref<32x32xbf16, #tpu.memory_space<vmem>>, %arg9: memref<32x1xf32, #tpu.memory_space<vmem>>, %arg10: memref<32x1xf32, #tpu.memory_space<vmem>>, %arg11: memref<32x1xf32, #tpu.memory_space<vmem>>, %arg12: memref<1x16x32xf32, #tpu.memory_space<vmem>>) attributes {dimension_semantics = [#tpu.dimension_semantics<parallel>, #tpu.dimension_semantics<arbitrary>], iteration_bounds = array<i64: 2, 1>, scalar_prefetch = 0 : i64, scratch_operands = 0 : i64, tpu.core_type = #tpu.core_type<tc>, window_params = [{transform_indices = @transform_0, window_bounds = array<i64: 1, 128>}, {transform_indices = @transform_1, window_bounds = array<i64: 1, 16, 128>}, {pipeline_mode = #tpu.pipeline_mode<synchronous>, transform_indices = @transform_2, window_bounds = array<i64: 32, 16>}, {pipeline_mode = #tpu.pipeline_mode<synchronous>, transform_indices = @transform_3, window_bounds = array<i64: 32, 1>}, {pipeline_mode = #tpu.pipeline_mode<synchronous>, transform_indices = @transform_4, window_bounds = array<i64: 32, 32>}, {pipeline_mode = #tpu.pipeline_mode<synchronous>, transform_indices = @transform_5, window_bounds = array<i64: 32, 1>}, {pipeline_mode = #tpu.pipeline_mode<synchronous>, transform_indices = @transform_6, window_bounds = array<i64: 32, 32>}, {pipeline_mode = #tpu.pipeline_mode<synchronous>, transform_indices = @transform_7, window_bounds = array<i64: 32, 1>}, {pipeline_mode = #tpu.pipeline_mode<synchronous>, transform_indices = @transform_8, window_bounds = array<i64: 32, 1>}, {pipeline_mode = #tpu.pipeline_mode<synchronous>, transform_indices = @transform_9, window_bounds = array<i64: 32, 1>}, {transform_indices = @transform_10, window_bounds = array<i64: 1, 16, 32>}]} {
    %c0 = arith.constant 0 : index
    %c0_0 = arith.constant 0 : index
    %0 = vector.load %arg4[%c0, %c0_0] : memref<32x16xbf16, #tpu.memory_space<vmem>>, vector<32x16xbf16>
    %c0_1 = arith.constant 0 : index
    %c0_2 = arith.constant 0 : index
    %c0_3 = arith.constant 0 : index
    %1 = vector.load %arg3[%c0_1, %c0_2, %c0_3] : memref<1x16x128xbf16, #tpu.memory_space<vmem>>, vector<1x16x128xbf16>
    %2 = vector.shape_cast %1 : vector<1x16x128xbf16> to vector<16x128xbf16>
    %cst = arith.constant dense<0.000000e+00> : vector<32x128xf32>
    %3 = tpu.matmul %0, %2, %cst {dimension_numbers = #tpu.dot_dimension_numbers<[1], [0], [0], [1], [0, 0, 1, 1], [], []>} : vector<32x16xbf16>, vector<16x128xbf16>, vector<32x128xf32> -> vector<32x128xf32>
    %c0_4 = arith.constant 0 : index
    %c0_5 = arith.constant 0 : index
    %4 = vector.load %arg5[%c0_4, %c0_5] : memref<32x1xf32, #tpu.memory_space<vmem>>, vector<32x1xf32>
    %5 = vector.broadcast %4 : vector<32x1xf32> to vector<32x128xf32>
    %6 = arith.addf %3, %5 : vector<32x128xf32>
    %cst_6 = arith.constant 5.000000e-01 : f32
    %7 = vector.broadcast %cst_6 : f32 to vector<32x128xf32>
    %8 = arith.mulf %7, %6 : vector<32x128xf32>
    %cst_7 = arith.constant 0.707106769 : f32
    %9 = vector.broadcast %cst_7 : f32 to vector<32x128xf32>
    %10 = arith.mulf %6, %9 : vector<32x128xf32>
    %11 = math.erf %10 : vector<32x128xf32>
    %cst_8 = arith.constant 1.000000e+00 : f32
    %12 = vector.broadcast %cst_8 : f32 to vector<32x128xf32>
    %13 = arith.addf %12, %11 : vector<32x128xf32>
    %14 = arith.mulf %8, %13 : vector<32x128xf32>
    %c0_9 = arith.constant 0 : index
    %c0_10 = arith.constant 0 : index
    %15 = vector.load %arg6[%c0_9, %c0_10] : memref<32x32xbf16, #tpu.memory_space<vmem>>, vector<32x32xbf16>
    %16 = arith.truncf %14 : vector<32x128xf32> to vector<32x128xbf16>
    %cst_11 = arith.constant dense<0.000000e+00> : vector<32x128xf32>
    %17 = tpu.matmul %15, %16, %cst_11 {dimension_numbers = #tpu.dot_dimension_numbers<[1], [0], [0], [1], [0, 0, 1, 1], [], []>} : vector<32x32xbf16>, vector<32x128xbf16>, vector<32x128xf32> -> vector<32x128xf32>
    %c0_12 = arith.constant 0 : index
    %c0_13 = arith.constant 0 : index
    %18 = vector.load %arg7[%c0_12, %c0_13] : memref<32x1xf32, #tpu.memory_space<vmem>>, vector<32x1xf32>
    %19 = vector.broadcast %18 : vector<32x1xf32> to vector<32x128xf32>
    %20 = arith.addf %17, %19 : vector<32x128xf32>
    %cst_14 = arith.constant 5.000000e-01 : f32
    %21 = vector.broadcast %cst_14 : f32 to vector<32x128xf32>
    %22 = arith.mulf %21, %20 : vector<32x128xf32>
    %cst_15 = arith.constant 0.707106769 : f32
    %23 = vector.broadcast %cst_15 : f32 to vector<32x128xf32>
    %24 = arith.mulf %20, %23 : vector<32x128xf32>
    %25 = math.erf %24 : vector<32x128xf32>
    %cst_16 = arith.constant 1.000000e+00 : f32
    %26 = vector.broadcast %cst_16 : f32 to vector<32x128xf32>
    %27 = arith.addf %26, %25 : vector<32x128xf32>
    %28 = arith.mulf %22, %27 : vector<32x128xf32>
    %c0_17 = arith.constant 0 : index
    %c0_18 = arith.constant 0 : index
    %29 = vector.load %arg8[%c0_17, %c0_18] : memref<32x32xbf16, #tpu.memory_space<vmem>>, vector<32x32xbf16>
    %30 = arith.truncf %28 : vector<32x128xf32> to vector<32x128xbf16>
    %cst_19 = arith.constant dense<0.000000e+00> : vector<32x128xf32>
    %31 = tpu.matmul %29, %30, %cst_19 {dimension_numbers = #tpu.dot_dimension_numbers<[1], [0], [0], [1], [0, 0, 1, 1], [], []>} : vector<32x32xbf16>, vector<32x128xbf16>, vector<32x128xf32> -> vector<32x128xf32>
    %c0_20 = arith.constant 0 : index
    %c0_21 = arith.constant 0 : index
    %32 = vector.load %arg9[%c0_20, %c0_21] : memref<32x1xf32, #tpu.memory_space<vmem>>, vector<32x1xf32>
    %33 = vector.broadcast %32 : vector<32x1xf32> to vector<32x128xf32>
    %34 = arith.addf %31, %33 : vector<32x128xf32>
    %cst_22 = arith.constant dense<0.000000e+00> : vector<128xf32>
    %35 = vector.multi_reduction <add>, %34, %cst_22 [0] : vector<32x128xf32> to vector<128xf32>
    %36 = vector.shape_cast %35 : vector<128xf32> to vector<1x128xf32>
    %cst_23 = arith.constant 3.200000e+01 : f32
    %37 = vector.broadcast %cst_23 : f32 to vector<1x128xf32>
    %38 = arith.divf %36, %37 : vector<1x128xf32>
    %39 = vector.broadcast %38 : vector<1x128xf32> to vector<32x128xf32>
    %40 = arith.subf %34, %39 : vector<32x128xf32>
    %41 = arith.mulf %40, %40 : vector<32x128xf32>
    %cst_24 = arith.constant dense<0.000000e+00> : vector<128xf32>
    %42 = vector.multi_reduction <add>, %41, %cst_24 [0] : vector<32x128xf32> to vector<128xf32>
    %43 = vector.shape_cast %42 : vector<128xf32> to vector<1x128xf32>
    %cst_25 = arith.constant 3.200000e+01 : f32
    %44 = vector.broadcast %cst_25 : f32 to vector<1x128xf32>
    %45 = arith.divf %43, %44 : vector<1x128xf32>
    %46 = vector.broadcast %38 : vector<1x128xf32> to vector<32x128xf32>
    %47 = arith.subf %34, %46 : vector<32x128xf32>
    %cst_26 = arith.constant 9.99999974E-6 : f32
    %48 = vector.broadcast %cst_26 : f32 to vector<1x128xf32>
    %49 = arith.addf %45, %48 : vector<1x128xf32>
    %50 = math.rsqrt %49 : vector<1x128xf32>
    %51 = vector.broadcast %50 : vector<1x128xf32> to vector<32x128xf32>
    %52 = arith.mulf %47, %51 : vector<32x128xf32>
    %c0_27 = arith.constant 0 : index
    %c0_28 = arith.constant 0 : index
    %53 = vector.load %arg10[%c0_27, %c0_28] : memref<32x1xf32, #tpu.memory_space<vmem>>, vector<32x1xf32>
    %54 = vector.broadcast %53 : vector<32x1xf32> to vector<32x128xf32>
    %55 = arith.mulf %52, %54 : vector<32x128xf32>
    %c0_29 = arith.constant 0 : index
    %c0_30 = arith.constant 0 : index
    %56 = vector.load %arg11[%c0_29, %c0_30] : memref<32x1xf32, #tpu.memory_space<vmem>>, vector<32x1xf32>
    %57 = vector.broadcast %56 : vector<32x1xf32> to vector<32x128xf32>
    %58 = arith.addf %55, %57 : vector<32x128xf32>
    %c0_i32 = arith.constant 0 : i32
    %59 = arith.cmpi eq, %arg1, %c0_i32 : i32
    %60 = arith.extui %59 : i1 to i32
    %c0_i32_31 = arith.constant 0 : i32
    %61 = arith.cmpi ne, %60, %c0_i32_31 : i32
    scf.if %61 {
      %cst_41 = arith.constant 0.000000e+00 : f32
      %75 = vector.broadcast %cst_41 : f32 to vector<16x32xf32>
      %c0_42 = arith.constant 0 : index
      %c0_43 = arith.constant 0 : index
      %c0_44 = arith.constant 0 : index
      %76 = vector.load %arg12[%c0_42, %c0_43, %c0_44] : memref<1x16x32xf32, #tpu.memory_space<vmem>>, vector<1x16x32xf32>
      %77 = vector.shape_cast %76 : vector<1x16x32xf32> to vector<16x32xf32>
      %78 = vector.shape_cast %75 : vector<16x32xf32> to vector<1x16x32xf32>
      tpu.vector_store %arg12[%c0_42, %c0_43, %c0_44], %78 {strides = array<i32>} : memref<1x16x32xf32, #tpu.memory_space<vmem>>, vector<1x16x32xf32>,
    } else {
    }
    %c0_32 = arith.constant 0 : index
    %c0_33 = arith.constant 0 : index
    %62 = vector.load %arg2[%c0_32, %c0_33] : memref<1x128xi32, #tpu.memory_space<vmem>>, vector<1x128xi32>
    %63 = tpu.iota {dimensions = array<i32: 0>} : vector<16x128xi32>
    %64 = vector.broadcast %62 : vector<1x128xi32> to vector<16x128xi32>
    %65 = arith.cmpi eq, %63, %64 : vector<16x128xi32>
    %66 = arith.extui %65 : vector<16x128xi1> to vector<16x128xi32>
    %67 = arith.sitofp %66 : vector<16x128xi32> to vector<16x128xf32>
    %c0_34 = arith.constant 0 : index
    %c0_35 = arith.constant 0 : index
    %c0_36 = arith.constant 0 : index
    %68 = vector.load %arg12[%c0_34, %c0_35, %c0_36] : memref<1x16x32xf32, #tpu.memory_space<vmem>>, vector<1x16x32xf32>
    %69 = vector.shape_cast %68 : vector<1x16x32xf32> to vector<16x32xf32>
    %cst_37 = arith.constant dense<0.000000e+00> : vector<16x32xf32>
    %70 = tpu.matmul %67, %58, %cst_37 {dimension_numbers = #tpu.dot_dimension_numbers<[1], [1], [0], [0], [0, 0, 1, 0], [], []>} : vector<16x128xf32>, vector<32x128xf32>, vector<16x32xf32> -> vector<16x32xf32>
    %71 = arith.addf %69, %70 : vector<16x32xf32>
    %c0_38 = arith.constant 0 : index
    %c0_39 = arith.constant 0 : index
    %c0_40 = arith.constant 0 : index
    %72 = vector.load %arg12[%c0_38, %c0_39, %c0_40] : memref<1x16x32xf32, #tpu.memory_space<vmem>>, vector<1x16x32xf32>
    %73 = vector.shape_cast %72 : vector<1x16x32xf32> to vector<16x32xf32>
    %74 = vector.shape_cast %71 : vector<16x32xf32> to vector<1x16x32xf32>
    tpu.vector_store %arg12[%c0_38, %c0_39, %c0_40], %74 {strides = array<i32>} : memref<1x16x32xf32, #tpu.memory_space<vmem>>, vector<1x16x32xf32>,
    return
  }
  func.func @transform_0(%arg0: i32, %arg1: i32) -> (i32, i32) {
    %c0_i32 = arith.constant 0 : i32
    %c0_i32_0 = arith.constant 0 : i32
    return %c0_i32, %arg1 : i32, i32
  }
  func.func @transform_1(%arg0: i32, %arg1: i32) -> (i32, i32, i32) {
    %c0_i32 = arith.constant 0 : i32
    %c0_i32_0 = arith.constant 0 : i32
    return %arg0, %c0_i32, %arg1 : i32, i32, i32
  }
  func.func @transform_2(%arg0: i32, %arg1: i32) -> (i32, i32) {
    %c0_i32 = arith.constant 0 : i32
    %c0_i32_0 = arith.constant 0 : i32
    %c0_i32_1 = arith.constant 0 : i32
    return %c0_i32, %c0_i32_0 : i32, i32
  }
  func.func @transform_3(%arg0: i32, %arg1: i32) -> (i32, i32) {
    %c0_i32 = arith.constant 0 : i32
    %c0_i32_0 = arith.constant 0 : i32
    %c0_i32_1 = arith.constant 0 : i32
    return %c0_i32, %c0_i32_0 : i32, i32
  }
  func.func @transform_4(%arg0: i32, %arg1: i32) -> (i32, i32) {
    %c0_i32 = arith.constant 0 : i32
    %c0_i32_0 = arith.constant 0 : i32
    %c0_i32_1 = arith.constant 0 : i32
    return %c0_i32, %c0_i32_0 : i32, i32
  }
  func.func @transform_5(%arg0: i32, %arg1: i32) -> (i32, i32) {
    %c0_i32 = arith.constant 0 : i32
    %c0_i32_0 = arith.constant 0 : i32
    %c0_i32_1 = arith.constant 0 : i32
    return %c0_i32, %c0_i32_0 : i32, i32
  }
  func.func @transform_6(%arg0: i32, %arg1: i32) -> (i32, i32) {
    %c0_i32 = arith.constant 0 : i32
    %c0_i32_0 = arith.constant 0 : i32
    %c0_i32_1 = arith.constant 0 : i32
    return %c0_i32, %c0_i32_0 : i32, i32
  }
  func.func @transform_7(%arg0: i32, %arg1: i32) -> (i32, i32) {
    %c0_i32 = arith.constant 0 : i32
    %c0_i32_0 = arith.constant 0 : i32
    %c0_i32_1 = arith.constant 0 : i32
    return %c0_i32, %c0_i32_0 : i32, i32
  }
  func.func @transform_8(%arg0: i32, %arg1: i32) -> (i32, i32) {
    %c0_i32 = arith.constant 0 : i32
    %c0_i32_0 = arith.constant 0 : i32
    %c0_i32_1 = arith.constant 0 : i32
    return %c0_i32, %c0_i32_0 : i32, i32
  }
  func.func @transform_9(%arg0: i32, %arg1: i32) -> (i32, i32) {
    %c0_i32 = arith.constant 0 : i32
    %c0_i32_0 = arith.constant 0 : i32
    %c0_i32_1 = arith.constant 0 : i32
    return %c0_i32, %c0_i32_0 : i32, i32
  }
  func.func @transform_10(%arg0: i32, %arg1: i32) -> (i32, i32, i32) {
    %c0_i32 = arith.constant 0 : i32
    %c0_i32_0 = arith.constant 0 : i32
    %c0_i32_1 = arith.constant 0 : i32
    return %arg0, %c0_i32, %c0_i32_0 : i32, i32, i32
  }
}

</mosaic_0001>

<bundles_post_ra>
// kernel: tpu_custom_call.1
= control target key start
LH: loop header
LB: loop body
LE: loop exit
PB: predicated region body
PF: predicated region fallthrough
CT: control target
= control target key end

     0   :  { %15 = vsyncpa [#allocation3], 0  ;;  %s1574_s0 = inlined_call_operand.vmem [shape: s32[1,128], index: 0, kind: input, shape index: {}]   ;;  %s1575_s1 = inlined_call_operand.vmem [shape: bf16[2,16,128], index: 1, kind: input, shape index: {}]   ;;  %s1576_s2 = inlined_call_operand.vmem [shape: bf16[32,16], index: 2, kind: input, shape index: {}]   ;;  %s1577_s3 = inlined_call_operand.vmem [shape: f32[32,1], index: 3, kind: input, shape index: {}]   ;;  %s1578_s4 = inlined_call_operand.vmem [shape: bf16[32,32], index: 4, kind: input, shape index: {}]   ;;  %s1579_s5 = inlined_call_operand.vmem [shape: f32[32,1], index: 5, kind: input, shape index: {}]   ;;  %s1580_s6 = inlined_call_operand.vmem [shape: bf16[32,32], index: 6, kind: input, shape index: {}]   ;;  %s1581_s7 = inlined_call_operand.vmem [shape: f32[32,1], index: 7, kind: input, shape index: {}]   ;;  %s1582_s8 = inlined_call_operand.vmem [shape: f32[32,1], index: 8, kind: input, shape index: {}]   ;;  %s1583_s9 = inlined_call_operand.vmem [shape: f32[32,1], index: 9, kind: input, shape index: {}]   ;;  %s1584_s10 = inlined_call_operand.hbm [shape: f32[2,16,32], index: 10, kind: output, shape index: {}]  }
   0x1   :  { %17 = vsyncpa [#allocation3 + $0x1], 0  ;;  %s1343_s13 = smov 0   ;;  %s1345_s14 = smov 0  }
   0x2   :  { %s1347_s15 = smov 0   ;;  %s1349_s16 = smov 0  }
   0x3   :  { %s1351_s17 = smov 0   ;;  %s1353_s18 = smov 0  }
   0x4 LB: > { %s1023_s19 = sadd.s32 4294967295, %s1280_s18   ;;  %s1024_s20 = sadd.s32 4294967294, %s1280_s18   ;;  %s1280_s18 = sphi %s1353_s18, %s23_s18   ;;  %s1276_s17 = sphi %s1351_s17, %s1594_s17   ;;  %s1272_s16 = sphi %s1349_s16, %s1593_s16   ;;  %s1268_s15 = sphi %s1347_s15, %s1592_s15   ;;  %s1264_s14 = sphi %s1345_s14, %s1591_s14   ;;  %s1260_s13 = sphi %s1343_s13, %s1590_s13  }
   0x5   : > { %s35_s21 = sadd.s32 1, %s1276_s17  ;;  %s264_s22 = sadd.s32 1, %s1268_s15 }
   0x6   : > { %p37_p0 = scmp.ge.s32.totalorder %s35_s21, 2  ;;  %p274_p1 = scmp.ne.s32.totalorder %s1268_s15, %s1264_s14 }
   0x7   : > { %p275_p2 = scmp.eq.s32.totalorder %s1023_s19, 1  ;;  %p280_p3 = scmp.ne.s32.totalorder %s1264_s14, %s1260_s13 }
   0x8   : > { %s1596_s21 = smov (%p37_p0, %s35_s21), 0  ;;  %p281_p5 = scmp.eq.s32.totalorder %s1024_s20, 1 }
   0x9   : > { %1586 = sst [smem:[#allocation5_spill]] %s1596_s21  ;;  %p1383_p4 = por %p275_p2, %p274_p1 }
   0xa   : > { %s261_s24 = ssub.s32 %s1276_s17, %s1596_s21  ;;  %p1028_p6 = scmp.ge.s32.totalorder %s1280_s18, 1 }
   0xb   : > { %p262_p7 = scmp.eq.s32.totalorder %s261_s24, 0  ;;  %p1390_p8 = por %p281_p5, %p280_p3 }
   0xc   : > { %p340_p9 = scmp.lt.s32.totalorder %s1280_s18, 3 }
   0xd   : > { %s1396_s26 = scalar_select %p262_p7, %s1268_s15, %s264_s22  }
   0xe   : > { %p341_p10 = pnand %p1028_p6, %p340_p9 }
   0xf   : > { %p387_p11 = scmp.lt.s32.totalorder (!%p341_p10), %s1272_s16, 1  ;;  %v1178_v0 = vld [vmem:[%s1576_s2] sm:$0xff] (!%p341_p10)   ;;  %vm442_vm0 = vcmask (!%p341_p10), 130048   ;;  %v404_v2 = vld [vmem:[%s1577_s3 + $0x10] sm:$0xff] (!%p341_p10)  ;;  %v1282_v3 = vmov (!%p341_p10), 0   ;;  %v403_v4 = vld [vmem:[%s1577_s3 + $0x8] sm:$0xff] (!%p341_p10) }
  0x10   : > { %344 = sbr.rel (%p341_p10) target bundleno = 1048 (0x418), region = 60  ;;  %1076 = vmatprep.mubr.msk.bf16.mxu0 (!%p341_p10), %vm442_vm0, %v1178_v0  ;;  %v402_v1 = vld [vmem:[%s1577_s3] sm:$0xff] (!%p341_p10)  ;;  %1175 = vset.pattern.permute.xlu0 (!%p341_p10), %v1282_v3  ;;  %v405_v5 = vld [vmem:[%s1577_s3 + $0x18] sm:$0xff] (!%p341_p10)  ;;  %v1179_v7 = vld [vmem:[%s1576_s2 + $0x8] sm:$0xff] (!%p341_p10)   ;;  %vm558_vm1 = vcmask (!%p341_p10), 261120   ;;  %s381_s12 = sand.u32 (!%p341_p10), 1, %s1264_s14  }
  0x11   : > { %1176 = vset.pattern.permute.xlu1 (!%p341_p10), %v1282_v3  ;;  %408 = vperm.xlu0 (!%p341_p10), %1175, %v402_v1   ;;  %v524_v8 = vld [vmem:[%s1579_s5] sm:$0xff] (!%p341_p10)  ;;  %v525_v9 = vld [vmem:[%s1579_s5 + $0x8] sm:$0xff] (!%p341_p10)  ;;  %v526_v10 = vld [vmem:[%s1579_s5 + $0x10] sm:$0xff] (!%p341_p10)  ;;  %s1029_s19 = sshll.u32 (!%p341_p10), %s381_s12, 4  ;;  %s1056_s22 = sshll.u32 (!%p341_p10), %s1272_s16, 8 }
  0x12   : > { %418 = vperm.xlu1 (!%p341_p10), %1176, %v404_v2   ;;  %v527_v11 = vld [vmem:[%s1579_s5 + $0x18] sm:$0xff] (!%p341_p10)  ;;  %v640_v12 = vld [vmem:[%s1581_s7] sm:$0xff] (!%p341_p10)  ;;  %v641_v13 = vld [vmem:[%s1581_s7 + $0x8] sm:$0xff] (!%p341_p10)  ;;  %s1285_s30 = smov (!%p341_p10), [#allocation2]  }
  0x13   : > { %v642_v14 = vld [vmem:[%s1581_s7 + $0x10] sm:$0xff] (!%p341_p10)  ;;  %v643_v15 = vld [vmem:[%s1581_s7 + $0x18] sm:$0xff] (!%p341_p10)  ;;  %v764_v16 = vld [vmem:[%s1582_s8] sm:$0xff] (!%p341_p10)  ;;  %s1206_s11 = sshll.u32 (!%p341_p10), %s1285_s30, 4  ;;  %s1207_s11 = int_to_ptr.vmem [resolvable:$false] %s1206_s11 }
  0x14   : > { %v765_v17 = vld [vmem:[%s1582_s8 + $0x8] sm:$0xff] (!%p341_p10)  ;;  %v792_v18 = vld [vmem:[%s1583_s9] sm:$0xff] (!%p341_p10)  ;;  %v766_v20 = vld [vmem:[%s1582_s8 + $0x10] sm:$0xff] (!%p341_p10) }
  0x15   : > { %413 = vperm.xlu0 (!%p341_p10), %1175, %v403_v4   ;;  %v793_v19 = vld [vmem:[%s1583_s9 + $0x8] sm:$0xff] (!%p341_p10)  ;;  %v767_v21 = vld [vmem:[%s1582_s8 + $0x18] sm:$0xff] (!%p341_p10)  ;;  %v794_v22 = vld [vmem:[%s1583_s9 + $0x10] sm:$0xff] (!%p341_p10) }
  0x16   : > { %423 = vperm.xlu1 (!%p341_p10), %1176, %v405_v5   ;;  %v795_v23 = vld [vmem:[%s1583_s9 + $0x18] sm:$0xff] (!%p341_p10)  ;;  %v1180_v24 = vld [vmem:[%s1578_s4] sm:$0xff] (!%p341_p10)   ;;  %v1181_v59 = vld [vmem:[%s1578_s4 + $0x8] sm:$0xff] (!%p341_p10)  }
  0x17   : > { %s388_s29 = scalar_select %p387_p11, %s1272_s16, 1  ;;  %1084 = vmatprep.mubr.msk.bf16.mxu1 %vm558_vm1, %v1180_v24  ;;  %v1182_v60 = vld [vmem:[%s1580_s6] sm:$0xff]  }
  0x18   : > { %s1528_s16 = scalar_lea.sflag [#allocation3], %s381_s12 }
  0x19   : > { %s1055_s20 = sshll.u32 %s388_s29, 3  ;;  %530 = vperm.xlu0 %1175, %v524_v8   ;;  %s1501_s29 = scalar_lea.vmem [#allocation2], %s1029_s19 }
  0x1a   : > { %s394_s27 = scalar_lea.vmem %s1575_s1, %s1055_s20  ;;  %535 = vperm.xlu1 %1176, %v525_v9   ;;  %s935_s20 = sshll.u32 %s1501_s29, 4  ;;  %s1520_s20 = int_to_ptr.vmem [resolvable:$true] %s935_s20 }
  0x1b   : > { %v1177_v6 = vld [vmem:[%s394_s27] sm:$0xff]   ;;  %s1518_s27 = scalar_lea.hbm %s1584_s10, %s1056_s22  ;;  %s1202_s28 = scalar_lea.vmem %s1520_s20, 256 }
  0x1c   : > { %1074 = vmatprep.subr.bf16.mxu0 %v1177_v6  ;;  %p1203_p12 = scmp.ne.s32.totalorder %s1520_s20, %s1202_s28  ;;  %s1208_s19 = scalar_lea.vmem %s1207_s11, 512 }
  0x1d   : > { %1075 = vmatpush3.bf16.msra.mxu0 %v1177_v6  ;;  %540 = vperm.xlu0 %1175, %v526_v10   ;;  %p1209_p1 = scmp.lt.s32.totalorder %s1520_s20, %s1207_s11  ;;  %p1210_p2 = scmp.lt.s32.totalorder %s1208_s19, %s1202_s28 }
  0x1e   : > { %545 = vperm.xlu1 %1176, %v527_v11   ;;  %p1204_p13 = pnand %p1203_p12, %p1383_p4 }
  0x1f   : > { %p1211_p3 = por %p1210_p2, %p1209_p1 }
  0x20   : > { %1077 = vmatmul.mubr.msk.bf16.vlgmr.msra.gmra.mrb[0].mxu0 %vm442_vm0, %v1179_v7  ;;  %p1205_p0 = pneg %p1204_p13 }
  0x21   : > { %646 = vperm.xlu0 %1175, %v640_v12   ;;  %1092 = vmatprep.mubr.msk.bf16.mxu0 %vm558_vm1, %v1182_v60 }
  0x22   : > { %651 = vperm.xlu1 %1176, %v641_v13   ;;  %p1212_p5 = pnand %p1211_p3, %p1205_p0 }
  0x25   : > { %656 = vperm.xlu0 %1175, %v642_v14  }
  0x26   : > { %661 = vperm.xlu1 %1176, %v643_v15  }
  0x29   : > { %770 = vperm.xlu0 %1175, %v764_v16  }
  0x2a   : > { %775 = vperm.xlu1 %1176, %v765_v17  }
  0x2d   : > { %798 = vperm.xlu0 %1175, %v792_v18  }
  0x2e   : > { %803 = vperm.xlu1 %1176, %v793_v19  }
  0x31   : > { %780 = vperm.xlu0 %1175, %v766_v20  }
  0x32   : > { %785 = vperm.xlu1 %1176, %v767_v21  }
  0x35   : > { %808 = vperm.xlu0 %1175, %v794_v22  }
  0x36   : > { %813 = vperm.xlu1 %1176, %v795_v23  }
  0x90   : > { %v409_v26 = vpop.permute.xlu0 %408 }
  0x91   : > { %v419_v25 = vpop.permute.xlu1 %418 }
  0x94   : > { %v414_v33 = vpop.permute.xlu0 %413 }
  0x95   : > { %v424_v30 = vpop.permute.xlu1 %423 }
  0x98   : > { %v531_v61 = vpop.permute.xlu0 %530 }
  0x99   : > { %v536_v62 = vpop.permute.xlu1 %535 }
  0x9c   : > { %v541_v63 = vpop.permute.xlu0 %540 }
  0x9d   : > { %v546_v3 = vpop.permute.xlu1 %545 }
  0xf3   : > { %v1078_v27 = vpop.f32.mrb[0].mxu0 }
  0xf4   : > { %v492_v28 = vadd.f32 %v1078_v27, %v419_v25  ;;  %v483_v29 = vpop.f32.mrb[1].mxu0 }
  0xf5   : > { %v484_v31 = vadd.f32 %v483_v29, %v409_v26  ;;  %v1079_v32 = vpop.f32.mrb[2].mxu0 }
  0xf6   : > { %v504_v34 = vmul.f32 0.70710677, %v492_v28  ;;  %v495_v35 = vadd.f32 %v1079_v32, %v424_v30  ;;  %v486_v36 = vpop.f32.mrb[3].mxu0  ;;  %v500_v47 = vmul.f32 0.5, %v492_v28  ;;  %v827_v32 = vlaneseq }
  0xf7   : > { %v502_v37 = vmul.f32 0.70710677, %v484_v31  ;;  %v487_v38 = vadd.f32 %v486_v36, %v414_v33  ;;  %v498_v50 = vmul.f32 0.5, %v484_v31  ;;  %v1183_v31 = vld [vmem:[%s1580_s6 + $0x8] sm:$0xff]   ;;  %v1490_v33 = vld [vmem:[%s1574_s0] ss:$0 sm:$0xff] }
  0xf8   : > { %1184 = verf.f32 %v504_v34  ;;  %v505_v39 = vmul.f32 0.70710677, %v495_v35  ;;  %v501_v48 = vmul.f32 0.5, %v495_v35  ;;  %v828_v34 = vshrl.u32 %v827_v32, 7 }
  0xf9   : > { %1186 = verf.f32 %v502_v37  ;;  %v503_v40 = vmul.f32 0.70710677, %v487_v38  ;;  %v499_v51 = vmul.f32 0.5, %v487_v38  ;;  %v1283_v36 = vmov 1.0   ;;  %v647_v38 = vpop.permute.xlu0 %646 }
  0xfa   : > { %1188 = verf.f32 %v505_v39  ;;  %v1492_v35 = vadd.s32 8, %v828_v34  ;;  %vm834_vm2 = vcmp.eq.s32.totalorder %v828_v34, %v1490_v33  ;;  %v1284_v37 = vmov 0.0  }
  0xfb   : > { %1190 = verf.f32 %v503_v40  ;;  %825 = vst.msk [vmem:[%s1501_s29 + $0x8] sm:$0xff] %vm558_vm1, %v1284_v37  ;;  %824 = vst.msk [vmem:[%s1501_s29] sm:$0xff] %vm558_vm1, %v1284_v37  ;;  %v652_v40 = vpop.permute.xlu1 %651 }
  0xfc   : > { %vm835_vm3 = vcmp.eq.s32.totalorder %v1492_v35, %v1490_v33 }
 0x102   : > { %v1185_v41 = vpop.eup %1184 }
 0x103   : > { %v1187_v42 = vpop.eup %1186  ;;  %v512_v43 = vadd.f32 1.0, %v1185_v41 }
 0x104   : > { %v1189_v44 = vpop.eup %1188  ;;  %v510_v45 = vadd.f32 1.0, %v1187_v42 }
 0x105   : > { %v1191_v46 = vpop.eup %1190  ;;  %v513_v49 = vadd.f32 1.0, %v1189_v44  ;;  %v516_v53 = vmul.f32 %v512_v43, %v500_v47 }
 0x106   : > { %v511_v52 = vadd.f32 1.0, %v1191_v46  ;;  %v514_v55 = vmul.f32 %v510_v45, %v498_v50  ;;  %v657_v46 = vpop.permute.xlu0 %656 }
 0x107   : > { %v517_v54 = vmul.f32 %v513_v49, %v501_v48  ;;  %v662_v49 = vpop.permute.xlu1 %661 }
 0x108   : > { %v515_v56 = vmul.f32 %v511_v52, %v499_v51 }
 0x109   : > { %v523_v57 = vpack.c.bf16 %v517_v54, %v516_v53 }
 0x10a   : > { %v522_v58 = vpack.c.bf16 %v515_v56, %v514_v55 }
 0x10c   : > { %1080 = vmatprep.subr.bf16.mxu1 %v522_v58 }
 0x10d   : > { %1081 = vmatpush3.bf16.msra.mxu1 %v522_v58 }
 0x10e   : > { %1082 = vmatprep.subr.bf16.mxu1 %v523_v57 }
 0x111   : > { %1083 = vmatpush3.bf16.msra.mxu1 %v523_v57 }
 0x114   : > { %1085 = vmatmul.mubr.msk.bf16.vlgmr.msra.gmra.mrb[0].mxu1 %vm558_vm1, %v1181_v59 }
 0x115   : > { %1104 = vmatprep.mubr.msk.f32.mxu1 %vm834_vm2, %v1283_v36 }
 0x1e7   : > { %v1086_v0 = vpop.f32.mrb[0].mxu1 }
 0x1e8   : > { %v608_v1 = vadd.f32 %v1086_v0, %v541_v63  ;;  %v599_v2 = vpop.f32.mrb[1].mxu1 }
 0x1e9   : > { %v600_v4 = vadd.f32 %v599_v2, %v531_v61  ;;  %v1087_v5 = vpop.f32.mrb[2].mxu1 }
 0x1ea   : > { %v620_v6 = vmul.f32 0.70710677, %v608_v1  ;;  %v611_v7 = vadd.f32 %v1087_v5, %v546_v3  ;;  %v602_v8 = vpop.f32.mrb[3].mxu1  ;;  %v616_v19 = vmul.f32 0.5, %v608_v1 }
 0x1eb   : > { %v618_v9 = vmul.f32 0.70710677, %v600_v4  ;;  %v603_v10 = vadd.f32 %v602_v8, %v536_v62  ;;  %v614_v22 = vmul.f32 0.5, %v600_v4 }
 0x1ec   : > { %1192 = verf.f32 %v620_v6  ;;  %v621_v11 = vmul.f32 0.70710677, %v611_v7  ;;  %v617_v20 = vmul.f32 0.5, %v611_v7 }
 0x1ed   : > { %1194 = verf.f32 %v618_v9  ;;  %v619_v12 = vmul.f32 0.70710677, %v603_v10  ;;  %v615_v23 = vmul.f32 0.5, %v603_v10 }
 0x1ee   : > { %1196 = verf.f32 %v621_v11 }
 0x1ef   : > { %1198 = verf.f32 %v619_v12 }
 0x1f6   : > { %v1193_v13 = vpop.eup %1192 }
 0x1f7   : > { %v1195_v14 = vpop.eup %1194  ;;  %v628_v15 = vadd.f32 1.0, %v1193_v13  ;;  %v771_v13 = vpop.permute.xlu0 %770 }
 0x1f8   : > { %v1197_v16 = vpop.eup %1196  ;;  %v626_v17 = vadd.f32 1.0, %v1195_v14  ;;  %v776_v14 = vpop.permute.xlu1 %775 }
 0x1f9   : > { %v1199_v18 = vpop.eup %1198  ;;  %v629_v21 = vadd.f32 1.0, %v1197_v16  ;;  %v632_v25 = vmul.f32 %v628_v15, %v616_v19 }
 0x1fa   : > { %v627_v24 = vadd.f32 1.0, %v1199_v18  ;;  %v630_v27 = vmul.f32 %v626_v17, %v614_v22 }
 0x1fb   : > { %v633_v26 = vmul.f32 %v629_v21, %v617_v20  ;;  %v799_v17 = vpop.permute.xlu0 %798 }
 0x1fc   : > { %v631_v28 = vmul.f32 %v627_v24, %v615_v23  ;;  %v804_v18 = vpop.permute.xlu1 %803 }
 0x1fd   : > { %v639_v29 = vpack.c.bf16 %v633_v26, %v632_v25 }
 0x1fe   : > { %v638_v30 = vpack.c.bf16 %v631_v28, %v630_v27 }
 0x1ff   : > { %v781_v19 = vpop.permute.xlu0 %780 }
 0x200   : > { %1088 = vmatprep.subr.bf16.mxu0 %v638_v30  ;;  %v786_v20 = vpop.permute.xlu1 %785 }
 0x201   : > { %1089 = vmatpush3.bf16.msra.mxu0 %v638_v30 }
 0x202   : > { %1090 = vmatprep.subr.bf16.mxu0 %v639_v29 }
 0x203   : > { %v809_v30 = vpop.permute.xlu0 %808 }
 0x205   : > { %1091 = vmatpush3.bf16.msra.mxu0 %v639_v29 }
 0x208   : > { %1093 = vmatmul.mubr.msk.bf16.vlgmr.msra.gmra.mrb[4].mxu0 %vm558_vm1, %v1183_v31  ;;  %v814_v31 = vpop.permute.xlu1 %813 }
 0x2db   : > { %v1094_v39 = vpop.f32.mrb[4].mxu0 }
 0x2dc   : > { %v714_v41 = vpop.f32.mrb[5].mxu0  ;;  %v723_v47 = vadd.f32 %v1094_v39, %v657_v46 }
 0x2dd   : > { %v1095_v42 = vpop.f32.mrb[6].mxu0  ;;  %v715_v44 = vadd.f32 %v714_v41, %v647_v38  ;;  %v841_v41 = vld [vmem:[%s1501_s29 + $0x8] sm:$0xff] }
 0x2de   : > { %v717_v43 = vpop.f32.mrb[7].mxu0  ;;  %v726_v50 = vadd.f32 %v1095_v42, %v662_v49  ;;  %v840_v42 = vld [vmem:[%s1501_s29] sm:$0xff] }
 0x2df   : > { %v718_v45 = vadd.f32 %v717_v43, %v652_v40 }
 0x2e1   : > { %v729_v48 = vadd.f32 %v718_v45, %v715_v44 }
 0x2e3   : > { %v730_v51 = vadd.f32 %v729_v48, %v723_v47 }
 0x2e5   : > { %v731_v52 = vadd.f32 %v730_v51, %v726_v50 }
 0x2e7   : > { %v732_v53 = vrot.slane %v731_v52, 4 }
 0x2e9   : > { %v733_v54 = vadd.f32 %v732_v53, %v731_v52 }
 0x2eb   : > { %v734_v55 = vrot.slane %v733_v54, 2 }
 0x2ed   : > { %v735_v56 = vadd.f32 %v734_v55, %v733_v54 }
 0x2ef   : > { %v736_v57 = vrot.slane %v735_v56, 1 }
 0x2f1   : > { %v737_v58 = vadd.f32 %v736_v57, %v735_v56 }
 0x2f3   : > { %v739_v59 = vmul.f32 0.03125, %v737_v58 }
 0x2f5   : > { %v740_v60 = vsub.f32 %v715_v44, %v739_v59  ;;  %v741_v61 = vsub.f32 %v718_v45, %v739_v59  ;;  %v742_v62 = vsub.f32 %v723_v47, %v739_v59  ;;  %v743_v63 = vsub.f32 %v726_v50, %v739_v59 }
 0x2f7   : > { %v744_v0 = vmul.f32 %v740_v60, %v740_v60  ;;  %v745_v1 = vmul.f32 %v741_v61, %v741_v61  ;;  %v746_v2 = vmul.f32 %v742_v62, %v742_v62  ;;  %v747_v4 = vmul.f32 %v743_v63, %v743_v63 }
 0x2f9   : > { %v748_v3 = vadd.f32 %v745_v1, %v744_v0 }
 0x2fb   : > { %v749_v5 = vadd.f32 %v748_v3, %v746_v2 }
 0x2fd   : > { %v750_v6 = vadd.f32 %v749_v5, %v747_v4 }
 0x2ff   : > { %v751_v7 = vrot.slane %v750_v6, 4 }
 0x301   : > { %v752_v8 = vadd.f32 %v751_v7, %v750_v6 }
 0x303   : > { %v753_v9 = vrot.slane %v752_v8, 2 }
 0x305   : > { %v754_v10 = vadd.f32 %v753_v9, %v752_v8 }
 0x307   : > { %v755_v11 = vrot.slane %v754_v10, 1 }
 0x309   : > { %v756_v12 = vadd.f32 %v755_v11, %v754_v10 }
 0x30b   : > { %v757_v15 = vmul.f32 0.03125, %v756_v12 }
 0x30d   : > { %v758_v16 = vadd.f32 1e-05, %v757_v15 }
 0x30f   : > { %1200 = vrsqrt.f32 %v758_v16 }
 0x319   : > { %v1201_v21 = vpop.eup %1200 }
 0x31a   : > { %v761_v22 = vmul.f32 %v1201_v21, %v741_v61  ;;  %v760_v23 = vmul.f32 %v1201_v21, %v740_v60  ;;  %v762_v24 = vmul.f32 %v1201_v21, %v742_v62  ;;  %v763_v25 = vmul.f32 %v1201_v21, %v743_v63 }
 0x31c   : > { %v789_v26 = vmul.f32 %v776_v14, %v761_v22  ;;  %v788_v27 = vmul.f32 %v771_v13, %v760_v23  ;;  %v790_v28 = vmul.f32 %v781_v19, %v762_v24  ;;  %v791_v29 = vmul.f32 %v786_v20, %v763_v25 }
 0x31e   : > { %v816_v32 = vadd.f32 %v799_v17, %v788_v27  ;;  %v817_v34 = vadd.f32 %v804_v18, %v789_v26  ;;  %v818_v37 = vadd.f32 %v809_v30, %v790_v28  ;;  %v819_v38 = vadd.f32 %v814_v31, %v791_v29 }
 0x320   : > { %v1107_v39 = vpack.c.bf16 %v817_v34, %v816_v32  ;;  %v1111_v40 = vpack.c.bf16 %v819_v38, %v818_v37 }
 0x322   : > { %1108 = vmatprep.subr.bf16.mxu1 %v1107_v39 }
 0x323   : > { %1110 = vmatpush3.bf16.xpose.msra.mxu1 %v1107_v39 }
 0x324   : > { %1112 = vmatprep.subr.bf16.mxu1 %v1111_v40 }
 0x32b   : > { %1114 = vmatpush3.bf16.xpose.msra.mxu1 %v1111_v40 }
 0x332   : > { %1105 = vmatmul.mubr.msk.f32.vlgmr.msra.gmra.mrb[4].mxu1 %vm835_vm3, %v1283_v36 }
 0x405   : > { %v1106_v43 = vpop.f32.mrb[4].mxu1 }
 0x406   : > { %v918_v44 = vadd.f32 %v1106_v43, %v841_v41  ;;  %v908_v45 = vpop.f32.mrb[5].mxu1 }
 0x407   : > { %v917_v33 = vadd.f32 %v908_v45, %v840_v42 }
 0x408   : > { %920 = vst.msk [vmem:[%s1501_s29 + $0x8] sm:$0xff] %vm558_vm1, %v918_v44 }
 0x409   : > { %919 = vst.msk [vmem:[%s1501_s29] sm:$0xff] %vm558_vm1, %v917_v33 }
 0x40a   : > { %1215 = shalt.err (!%p1212_p5)
}
 0x40b   : > { %s1216_s12 = scalar_lea.hbm %s1518_s27, 256  ;;  %s1220_s21 = scalar_lea.hbm %s1584_s10, 512 }
 0x40c   : > { %p1217_p6 = scmp.ne.s32.totalorder %s1518_s27, %s1216_s12  ;;  %p1221_p10 = scmp.lt.u32.totalorder %s1518_s27, %s1584_s10 }
 0x40d   : > { %p1222_p11 = scmp.lt.u32.totalorder %s1220_s21, %s1216_s12  ;;  %p1224_p13 = scmp.lt.u32.totalorder %s1216_s12, %s1518_s27 }
 0x40e   : > { %p1218_p7 = pnand %p1217_p6, %p1383_p4 }
 0x40f   : > { %p1223_p12 = por %p1222_p11, %p1221_p10 }
 0x410   : > { %p1219_p9 = pneg %p1218_p7 }
 0x411   : > { %p1225_p0 = por %p1224_p13, %p1223_p12 }
 0x413   : > { %p1226_p1 = pnand %p1225_p0, %p1219_p9 }
 0x415   : > { %1229 = shalt.err (!%p1226_p1)
}
 0x416   : > { %s1286_s28 = smov 128   ;;  %s1287_s11 = smov 8  }
 0x417   : > { %1115 = dma.vmem_to_hbm [thread:$0]  (%p1383_p4), %s1520_s20, 256, %s1518_s27, %s1528_s16, %s1286_s28, %s1286_s28, %s1287_s11  }
 0x418 PF: > { %p1121_p2 = scmp.ge.s32.totalorder %s1280_s18, 2  ;;  %s950_s19 = sand.u32 1, %s1260_s13  }
 0x419   : > { %s951_s12 = scalar_lea.sflag [#allocation3], %s950_s19 }
 0x41a   : > { %p1118_p3 = pnand %p1121_p2, %p1390_p8 }
 0x41c   : > { %1255 = dma.done.wait (!%p1118_p3), %s951_s12, 256  }
 0x41d   : > { %1257 = vsyncadd (!%p1118_p3), %s951_s12, 4294967040  ;;  %s23_s18 = sadd.s32 1, %s1280_s18   ;;  %s1589_s23 = sld [smem:[#allocation5_spill]] }
 0x41e   : > { %p20_p5 = scmp.ge.s32.totalorder %s23_s18, 4   ;;  %s1590_s13 = smov %s1264_s14 }
 0x41f   : > { %s1591_s14 = smov %s1268_s15  ;;  %s1592_s15 = smov %s1396_s26 }
 0x420   : > { %s1593_s16 = smov %s1276_s17  ;;  %22 = sbr.rel (!%p20_p5) target bundleno = 4 (0x4), region = 102 }
 0x423   : > { %s1594_s17 = smov %s1589_s23 }
 0x427   :  { %956 = vsyncpa [#allocation3], 1 }
 0x428   :  { %958 = vsyncpa [#allocation3 + $0x1], 1 }

</bundles_post_ra>
